<compile_context>
chip_gen: v5e
topology: v5e:2x2
jax: 0.10.0
libtpu: 0.0.40
codegen_flags: <defaults>
</compile_context>

<pallas_src>
import jax
import jax.numpy as jnp
from jax.experimental import pallas as pl
from jax.experimental.pallas import tpu as pltpu


def _round_up(x, m):
    return (x + m - 1) // m * m


def _mlp_kernel(idx_ref,            # (tm, 1)      int32  state indices
                t1_ref,             # (S, 128)     f32    fc1 table = W1 + b1 (bias folded)
                w2_ref, b2_ref,     # (128, 128)   bf16 / (1, 128) f32   (hidden-2 padded)
                w3_ref, b3_ref,     # (128, A_pad) bf16 / (1, A_pad) f32
                out_ref):           # (tm, A_pad)  f32
    idx = idx_ref[...]                               # (tm, 1) int32
    t1 = t1_ref[...]                                 # (S, 128) f32, 2 vregs

    # fc1 + bias as an exact f32 select-accumulate (vectorized "gather"):
    #   relu(one_hot(state) @ W1 + b1) == relu((W1 + b1)[state])
    # Out-of-range / padded indices simply contribute zero rows (self-clamping,
    # no OOB reads); padded batch rows carry index 0 and are sliced away in the
    # wrapper.
    S = t1.shape[0]
    h1 = jnp.zeros((idx.shape[0], t1.shape[1]), jnp.float32)
    for s in range(S):                               # static, S == state_size (16)
        h1 = h1 + jnp.where(idx == s, t1[s:s + 1, :], 0.0)
    h1 = jnp.maximum(h1, 0.0)                        # relu(fc1), f32 (held in vregs)

    # fc2: bf16 MXU operands, f32 accumulation, f32 epilogue.
    h2 = jnp.dot(h1.astype(w2_ref.dtype), w2_ref[...],
                 preferred_element_type=jnp.float32) + b2_ref[...]
    h2 = jnp.maximum(h2, 0.0)                        # relu(fc2); padded lanes stay 0

    # fc3: padded hidden rows of w3 are zero -> exact.
    out_ref[...] = jnp.dot(h2.astype(w3_ref.dtype), w3_ref[...],
                           preferred_element_type=jnp.float32) + b3_ref[...]


def _choose_tile(B):
    """Batch tile: multiple of 8, <=512 rows, and >=2 tiles whenever B > 16 so
    v7x can shard the 'parallel' batch axis across its 2 TensorCores."""
    B8 = _round_up(max(B, 1), 8)
    if B8 <= 16:
        return B8
    return min(512, _round_up(pl.cdiv(B8, 2), 8))


def deep_q_network_forward(state_idx, packed, action_size):
    """state_idx: int32 scalar or (B,) array of state indices.
    packed: output of pack_params().  Returns (B, action_size) f32 Q-values
    (or (action_size,) for a scalar input), matching DeepQNetwork.forward."""
    state_idx = jnp.asarray(state_idx, jnp.int32)
    scalar_input = state_idx.ndim == 0
    if scalar_input:
        state_idx = state_idx[None]
    B = state_idx.shape[0]

    t1, w2, b2, w3, b3 = (packed["t1"], packed["w2"], packed["b2"],
                          packed["w3"], packed["b3"])
    S = t1.shape[0]
    A_pad = w3.shape[1]
    A = action_size

    tm = _choose_tile(B)
    B_pad = _round_up(B, tm)
    num_tiles = B_pad // tm

    # Padded rows carry index 0 (valid), compute row-0 Q-values, and are
    # sliced away below -- they never accumulate into real rows.
    idx2d = jnp.pad(state_idx, (0, B_pad - B)).reshape(B_pad, 1)

    cost = pl.CostEstimate(
        flops=2 * B_pad * (S * 128 + 128 * 128 + 128 * A_pad),
        transcendentals=0,
        bytes_accessed=(4 * B_pad                           # indices
                        + 4 * S * 128                       # fc1 table (f32)
                        + 2 * 128 * 128 + 4 * 128           # w2 (bf16) + b2
                        + 2 * 128 * A_pad + 4 * A_pad       # w3 (bf16) + b3
                        + 4 * B_pad * A_pad))               # output (f32)

    const = lambda i: (0, 0)      # weights/biases: same VMEM-resident block every step

    out = pl.pallas_call(
        _mlp_kernel,
        out_shape=jax.ShapeDtypeStruct((B_pad, A_pad), jnp.float32),
        grid=(num_tiles,),
        in_specs=[
            pl.BlockSpec((tm, 1), lambda i: (i, 0)),        # state indices (VMEM)
            pl.BlockSpec((S, 128), const),                  # fc1 table (f32, bias folded)
            pl.BlockSpec((128, 128), const),                # w2 (bf16, hidden-2 padded)
            pl.BlockSpec((1, 128), const),                  # b2 (f32)
            pl.BlockSpec((128, A_pad), const),              # w3 (bf16, padded)
            pl.BlockSpec((1, A_pad), const),                # b3 (f32, padded)
        ],
        out_specs=pl.BlockSpec((tm, A_pad), lambda i: (i, 0)),
        compiler_params=pltpu.CompilerParams(
            dimension_semantics=("parallel",)),
        cost_estimate=cost,
    )(idx2d, t1, w2, b2, w3, b3)

    q = out[:B, :A]
    return q[0] if scalar_input else q


def init_params(key, state_size, action_size):
    """PyTorch nn.Linear default init, U(-1/sqrt(fan_in), 1/sqrt(fan_in)).
    Raw f32 params, weights stored transposed as (in, out)."""
    def linear(k, fan_in, fan_out):
        kw, kb = jax.random.split(k)
        bound = 1.0 / (fan_in ** 0.5)
        w = jax.random.uniform(kw, (fan_in, fan_out), jnp.float32, -bound, bound)
        b = jax.random.uniform(kb, (1, fan_out), jnp.float32, -bound, bound)
        return w, b

    k1, k2, k3 = jax.random.split(key, 3)
    w1, b1 = linear(k1, state_size, 128)
    w2, b2 = linear(k2, 128, 64)
    w3, b3 = linear(k3, 64, action_size)
    return {"w1": w1, "b1": b1, "w2": w2, "b2": b2, "w3": w3, "b3": b3}


def pack_params(raw, action_size):
    """One-time packing (hoisted out of the forward path): fold b1 into the
    fc1 table, zero-pad hidden-2 (64->128) and actions (A->128), cast MXU
    operands to bf16.  All padding is exact (zeros)."""
    H2 = raw["w2"].shape[1]
    H2_pad = _round_up(H2, 128)
    A_pad = _round_up(action_size, 128)
    t1 = (raw["w1"] + raw["b1"]).astype(jnp.float32)                        # (S, 128)
    w2 = jnp.pad(raw["w2"].astype(jnp.bfloat16), ((0, 0), (0, H2_pad - H2)))
    b2 = jnp.pad(raw["b2"], ((0, 0), (0, H2_pad - H2))).astype(jnp.float32)
    w3 = jnp.pad(raw["w3"].astype(jnp.bfloat16),
                 ((0, H2_pad - H2), (0, A_pad - action_size)))
    b3 = jnp.pad(raw["b3"], ((0, 0), (0, A_pad - action_size))).astype(jnp.float32)
    return {"t1": t1, "w2": w2, "b2": b2, "w3": w3, "b3": b3}


def _reference(state_idx, raw):
    """Pure-JAX reference with the kernel's numerics (exact f32 fc1, bf16 MXU
    operands with f32 accumulation for fc2/fc3)."""
    idx = jnp.atleast_1d(jnp.asarray(state_idx, jnp.int32))
    h1 = jnp.maximum(raw["w1"][idx] + raw["b1"], 0.0)
    h2 = jnp.dot(h1.astype(jnp.bfloat16), raw["w2"].astype(jnp.bfloat16),
                 preferred_element_type=jnp.float32) + raw["b2"]
    h2 = jnp.maximum(h2, 0.0)
    return jnp.dot(h2.astype(jnp.bfloat16), raw["w3"].astype(jnp.bfloat16),
                   preferred_element_type=jnp.float32) + raw["b3"]


if __name__ == "__main__":
    state_size = 16
    action_size = 4

    key = jax.random.PRNGKey(0)
    kp, ks1, ks2 = jax.random.split(key, 3)
    raw = init_params(kp, state_size, action_size)
    packed = pack_params(raw, action_size)

    # small replay batch (single 8-row tile)
    state_idx = jax.random.randint(ks1, (8,), 0, state_size, dtype=jnp.int32)
    q = jax.block_until_ready(deep_q_network_forward(state_idx, packed, action_size))
    assert q.shape == (8, action_size)
    assert jnp.allclose(q, _reference(state_idx, raw), atol=1e-3, rtol=1e-3), "batch-8 mismatch"

    # larger batch: two 128-row tiles -> exercises the parallel batch grid (both v7x TCs)
    big_idx = jax.random.randint(ks2, (256,), 0, state_size, dtype=jnp.int32)
    q_big = jax.block_until_ready(deep_q_network_forward(big_idx, packed, action_size))
    assert q_big.shape == (256, action_size)
    assert jnp.allclose(q_big, _reference(big_idx, raw), atol=1e-3, rtol=1e-3), "batch-256 mismatch"

    # scalar-state branch of the original module
    q1 = jax.block_until_ready(deep_q_network_forward(jnp.int32(3), packed, action_size))
    assert q1.shape == (action_size,)
    assert jnp.allclose(q1, _reference(3, raw)[0], atol=1e-3, rtol=1e-3), "scalar mismatch"

    print("KERNEL_OK")
</pallas_src>

<mosaic_0001>
module attributes {stable_mosaic.version = 11 : i64} {
  func.func @_mlp_kernel(%arg0: i32, %arg1: memref<8x1xi32, #tpu.memory_space<vmem>>, %arg2: memref<16x128xf32, #tpu.memory_space<vmem>>, %arg3: memref<128x128xbf16, #tpu.memory_space<vmem>>, %arg4: memref<1x128xf32, #tpu.memory_space<vmem>>, %arg5: memref<128x128xbf16, #tpu.memory_space<vmem>>, %arg6: memref<1x128xf32, #tpu.memory_space<vmem>>, %arg7: memref<8x128xf32, #tpu.memory_space<vmem>>) attributes {dimension_semantics = [#tpu.dimension_semantics<parallel>], iteration_bounds = array<i64: 1>, scalar_prefetch = 0 : i64, scratch_operands = 0 : i64, tpu.core_type = #tpu.core_type<tc>, window_params = [{transform_indices = @transform_0, window_bounds = array<i64: 8, 1>}, {pipeline_mode = #tpu.pipeline_mode<synchronous>, transform_indices = @transform_1, window_bounds = array<i64: 16, 128>}, {pipeline_mode = #tpu.pipeline_mode<synchronous>, transform_indices = @transform_2, window_bounds = array<i64: 128, 128>}, {pipeline_mode = #tpu.pipeline_mode<synchronous>, transform_indices = @transform_3, window_bounds = array<i64: 1, 128>}, {pipeline_mode = #tpu.pipeline_mode<synchronous>, transform_indices = @transform_4, window_bounds = array<i64: 128, 128>}, {pipeline_mode = #tpu.pipeline_mode<synchronous>, transform_indices = @transform_5, window_bounds = array<i64: 1, 128>}, {transform_indices = @transform_6, window_bounds = array<i64: 8, 128>}]} {
    %c0 = arith.constant 0 : index
    %c0_0 = arith.constant 0 : index
    %0 = vector.load %arg1[%c0, %c0_0] : memref<8x1xi32, #tpu.memory_space<vmem>>, vector<8x1xi32>
    %c0_1 = arith.constant 0 : index
    %c0_2 = arith.constant 0 : index
    %1 = vector.load %arg2[%c0_1, %c0_2] : memref<16x128xf32, #tpu.memory_space<vmem>>, vector<16x128xf32>
    %cst = arith.constant 0.000000e+00 : f32
    %2 = vector.broadcast %cst : f32 to vector<8x128xf32>
    %c0_i32 = arith.constant 0 : i32
    %3 = vector.broadcast %c0_i32 : i32 to vector<8x1xi32>
    %4 = arith.cmpi eq, %0, %3 : vector<8x1xi32>
    %5 = vector.extract_strided_slice %1 {offsets = [0, 0], sizes = [1, 128], strides = [1, 1]} : vector<16x128xf32> to vector<1x128xf32>
    %cst_3 = arith.constant 0.000000e+00 : f32
    %6 = vector.shape_cast %4 : vector<8x1xi1> to vector<8x1xi1>
    %7 = vector.broadcast %6 : vector<8x1xi1> to vector<8x128xi1>
    %8 = vector.shape_cast %5 : vector<1x128xf32> to vector<1x128xf32>
    %9 = vector.broadcast %8 : vector<1x128xf32> to vector<8x128xf32>
    %10 = vector.broadcast %cst_3 : f32 to vector<8x128xf32>
    %11 = arith.select %7, %9, %10 : vector<8x128xi1>, vector<8x128xf32>
    %12 = arith.addf %2, %11 : vector<8x128xf32>
    %c1_i32 = arith.constant 1 : i32
    %13 = vector.broadcast %c1_i32 : i32 to vector<8x1xi32>
    %14 = arith.cmpi eq, %0, %13 : vector<8x1xi32>
    %15 = vector.extract_strided_slice %1 {offsets = [1, 0], sizes = [1, 128], strides = [1, 1]} : vector<16x128xf32> to vector<1x128xf32>
    %cst_4 = arith.constant 0.000000e+00 : f32
    %16 = vector.shape_cast %14 : vector<8x1xi1> to vector<8x1xi1>
    %17 = vector.broadcast %16 : vector<8x1xi1> to vector<8x128xi1>
    %18 = vector.shape_cast %15 : vector<1x128xf32> to vector<1x128xf32>
    %19 = vector.broadcast %18 : vector<1x128xf32> to vector<8x128xf32>
    %20 = vector.broadcast %cst_4 : f32 to vector<8x128xf32>
    %21 = arith.select %17, %19, %20 : vector<8x128xi1>, vector<8x128xf32>
    %22 = arith.addf %12, %21 : vector<8x128xf32>
    %c2_i32 = arith.constant 2 : i32
    %23 = vector.broadcast %c2_i32 : i32 to vector<8x1xi32>
    %24 = arith.cmpi eq, %0, %23 : vector<8x1xi32>
    %25 = vector.extract_strided_slice %1 {offsets = [2, 0], sizes = [1, 128], strides = [1, 1]} : vector<16x128xf32> to vector<1x128xf32>
    %cst_5 = arith.constant 0.000000e+00 : f32
    %26 = vector.shape_cast %24 : vector<8x1xi1> to vector<8x1xi1>
    %27 = vector.broadcast %26 : vector<8x1xi1> to vector<8x128xi1>
    %28 = vector.shape_cast %25 : vector<1x128xf32> to vector<1x128xf32>
    %29 = vector.broadcast %28 : vector<1x128xf32> to vector<8x128xf32>
    %30 = vector.broadcast %cst_5 : f32 to vector<8x128xf32>
    %31 = arith.select %27, %29, %30 : vector<8x128xi1>, vector<8x128xf32>
    %32 = arith.addf %22, %31 : vector<8x128xf32>
    %c3_i32 = arith.constant 3 : i32
    %33 = vector.broadcast %c3_i32 : i32 to vector<8x1xi32>
    %34 = arith.cmpi eq, %0, %33 : vector<8x1xi32>
    %35 = vector.extract_strided_slice %1 {offsets = [3, 0], sizes = [1, 128], strides = [1, 1]} : vector<16x128xf32> to vector<1x128xf32>
    %cst_6 = arith.constant 0.000000e+00 : f32
    %36 = vector.shape_cast %34 : vector<8x1xi1> to vector<8x1xi1>
    %37 = vector.broadcast %36 : vector<8x1xi1> to vector<8x128xi1>
    %38 = vector.shape_cast %35 : vector<1x128xf32> to vector<1x128xf32>
    %39 = vector.broadcast %38 : vector<1x128xf32> to vector<8x128xf32>
    %40 = vector.broadcast %cst_6 : f32 to vector<8x128xf32>
    %41 = arith.select %37, %39, %40 : vector<8x128xi1>, vector<8x128xf32>
    %42 = arith.addf %32, %41 : vector<8x128xf32>
    %c4_i32 = arith.constant 4 : i32
    %43 = vector.broadcast %c4_i32 : i32 to vector<8x1xi32>
    %44 = arith.cmpi eq, %0, %43 : vector<8x1xi32>
    %45 = vector.extract_strided_slice %1 {offsets = [4, 0], sizes = [1, 128], strides = [1, 1]} : vector<16x128xf32> to vector<1x128xf32>
    %cst_7 = arith.constant 0.000000e+00 : f32
    %46 = vector.shape_cast %44 : vector<8x1xi1> to vector<8x1xi1>
    %47 = vector.broadcast %46 : vector<8x1xi1> to vector<8x128xi1>
    %48 = vector.shape_cast %45 : vector<1x128xf32> to vector<1x128xf32>
    %49 = vector.broadcast %48 : vector<1x128xf32> to vector<8x128xf32>
    %50 = vector.broadcast %cst_7 : f32 to vector<8x128xf32>
    %51 = arith.select %47, %49, %50 : vector<8x128xi1>, vector<8x128xf32>
    %52 = arith.addf %42, %51 : vector<8x128xf32>
    %c5_i32 = arith.constant 5 : i32
    %53 = vector.broadcast %c5_i32 : i32 to vector<8x1xi32>
    %54 = arith.cmpi eq, %0, %53 : vector<8x1xi32>
    %55 = vector.extract_strided_slice %1 {offsets = [5, 0], sizes = [1, 128], strides = [1, 1]} : vector<16x128xf32> to vector<1x128xf32>
    %cst_8 = arith.constant 0.000000e+00 : f32
    %56 = vector.shape_cast %54 : vector<8x1xi1> to vector<8x1xi1>
    %57 = vector.broadcast %56 : vector<8x1xi1> to vector<8x128xi1>
    %58 = vector.shape_cast %55 : vector<1x128xf32> to vector<1x128xf32>
    %59 = vector.broadcast %58 : vector<1x128xf32> to vector<8x128xf32>
    %60 = vector.broadcast %cst_8 : f32 to vector<8x128xf32>
    %61 = arith.select %57, %59, %60 : vector<8x128xi1>, vector<8x128xf32>
    %62 = arith.addf %52, %61 : vector<8x128xf32>
    %c6_i32 = arith.constant 6 : i32
    %63 = vector.broadcast %c6_i32 : i32 to vector<8x1xi32>
    %64 = arith.cmpi eq, %0, %63 : vector<8x1xi32>
    %65 = vector.extract_strided_slice %1 {offsets = [6, 0], sizes = [1, 128], strides = [1, 1]} : vector<16x128xf32> to vector<1x128xf32>
    %cst_9 = arith.constant 0.000000e+00 : f32
    %66 = vector.shape_cast %64 : vector<8x1xi1> to vector<8x1xi1>
    %67 = vector.broadcast %66 : vector<8x1xi1> to vector<8x128xi1>
    %68 = vector.shape_cast %65 : vector<1x128xf32> to vector<1x128xf32>
    %69 = vector.broadcast %68 : vector<1x128xf32> to vector<8x128xf32>
    %70 = vector.broadcast %cst_9 : f32 to vector<8x128xf32>
    %71 = arith.select %67, %69, %70 : vector<8x128xi1>, vector<8x128xf32>
    %72 = arith.addf %62, %71 : vector<8x128xf32>
    %c7_i32 = arith.constant 7 : i32
    %73 = vector.broadcast %c7_i32 : i32 to vector<8x1xi32>
    %74 = arith.cmpi eq, %0, %73 : vector<8x1xi32>
    %75 = vector.extract_strided_slice %1 {offsets = [7, 0], sizes = [1, 128], strides = [1, 1]} : vector<16x128xf32> to vector<1x128xf32>
    %cst_10 = arith.constant 0.000000e+00 : f32
    %76 = vector.shape_cast %74 : vector<8x1xi1> to vector<8x1xi1>
    %77 = vector.broadcast %76 : vector<8x1xi1> to vector<8x128xi1>
    %78 = vector.shape_cast %75 : vector<1x128xf32> to vector<1x128xf32>
    %79 = vector.broadcast %78 : vector<1x128xf32> to vector<8x128xf32>
    %80 = vector.broadcast %cst_10 : f32 to vector<8x128xf32>
    %81 = arith.select %77, %79, %80 : vector<8x128xi1>, vector<8x128xf32>
    %82 = arith.addf %72, %81 : vector<8x128xf32>
    %c8_i32 = arith.constant 8 : i32
    %83 = vector.broadcast %c8_i32 : i32 to vector<8x1xi32>
    %84 = arith.cmpi eq, %0, %83 : vector<8x1xi32>
    %85 = vector.extract_strided_slice %1 {offsets = [8, 0], sizes = [1, 128], strides = [1, 1]} : vector<16x128xf32> to vector<1x128xf32>
    %cst_11 = arith.constant 0.000000e+00 : f32
    %86 = vector.shape_cast %84 : vector<8x1xi1> to vector<8x1xi1>
    %87 = vector.broadcast %86 : vector<8x1xi1> to vector<8x128xi1>
    %88 = vector.shape_cast %85 : vector<1x128xf32> to vector<1x128xf32>
    %89 = vector.broadcast %88 : vector<1x128xf32> to vector<8x128xf32>
    %90 = vector.broadcast %cst_11 : f32 to vector<8x128xf32>
    %91 = arith.select %87, %89, %90 : vector<8x128xi1>, vector<8x128xf32>
    %92 = arith.addf %82, %91 : vector<8x128xf32>
    %c9_i32 = arith.constant 9 : i32
    %93 = vector.broadcast %c9_i32 : i32 to vector<8x1xi32>
    %94 = arith.cmpi eq, %0, %93 : vector<8x1xi32>
    %95 = vector.extract_strided_slice %1 {offsets = [9, 0], sizes = [1, 128], strides = [1, 1]} : vector<16x128xf32> to vector<1x128xf32>
    %cst_12 = arith.constant 0.000000e+00 : f32
    %96 = vector.shape_cast %94 : vector<8x1xi1> to vector<8x1xi1>
    %97 = vector.broadcast %96 : vector<8x1xi1> to vector<8x128xi1>
    %98 = vector.shape_cast %95 : vector<1x128xf32> to vector<1x128xf32>
    %99 = vector.broadcast %98 : vector<1x128xf32> to vector<8x128xf32>
    %100 = vector.broadcast %cst_12 : f32 to vector<8x128xf32>
    %101 = arith.select %97, %99, %100 : vector<8x128xi1>, vector<8x128xf32>
    %102 = arith.addf %92, %101 : vector<8x128xf32>
    %c10_i32 = arith.constant 10 : i32
    %103 = vector.broadcast %c10_i32 : i32 to vector<8x1xi32>
    %104 = arith.cmpi eq, %0, %103 : vector<8x1xi32>
    %105 = vector.extract_strided_slice %1 {offsets = [10, 0], sizes = [1, 128], strides = [1, 1]} : vector<16x128xf32> to vector<1x128xf32>
    %cst_13 = arith.constant 0.000000e+00 : f32
    %106 = vector.shape_cast %104 : vector<8x1xi1> to vector<8x1xi1>
    %107 = vector.broadcast %106 : vector<8x1xi1> to vector<8x128xi1>
    %108 = vector.shape_cast %105 : vector<1x128xf32> to vector<1x128xf32>
    %109 = vector.broadcast %108 : vector<1x128xf32> to vector<8x128xf32>
    %110 = vector.broadcast %cst_13 : f32 to vector<8x128xf32>
    %111 = arith.select %107, %109, %110 : vector<8x128xi1>, vector<8x128xf32>
    %112 = arith.addf %102, %111 : vector<8x128xf32>
    %c11_i32 = arith.constant 11 : i32
    %113 = vector.broadcast %c11_i32 : i32 to vector<8x1xi32>
    %114 = arith.cmpi eq, %0, %113 : vector<8x1xi32>
    %115 = vector.extract_strided_slice %1 {offsets = [11, 0], sizes = [1, 128], strides = [1, 1]} : vector<16x128xf32> to vector<1x128xf32>
    %cst_14 = arith.constant 0.000000e+00 : f32
    %116 = vector.shape_cast %114 : vector<8x1xi1> to vector<8x1xi1>
    %117 = vector.broadcast %116 : vector<8x1xi1> to vector<8x128xi1>
    %118 = vector.shape_cast %115 : vector<1x128xf32> to vector<1x128xf32>
    %119 = vector.broadcast %118 : vector<1x128xf32> to vector<8x128xf32>
    %120 = vector.broadcast %cst_14 : f32 to vector<8x128xf32>
    %121 = arith.select %117, %119, %120 : vector<8x128xi1>, vector<8x128xf32>
    %122 = arith.addf %112, %121 : vector<8x128xf32>
    %c12_i32 = arith.constant 12 : i32
    %123 = vector.broadcast %c12_i32 : i32 to vector<8x1xi32>
    %124 = arith.cmpi eq, %0, %123 : vector<8x1xi32>
    %125 = vector.extract_strided_slice %1 {offsets = [12, 0], sizes = [1, 128], strides = [1, 1]} : vector<16x128xf32> to vector<1x128xf32>
    %cst_15 = arith.constant 0.000000e+00 : f32
    %126 = vector.shape_cast %124 : vector<8x1xi1> to vector<8x1xi1>
    %127 = vector.broadcast %126 : vector<8x1xi1> to vector<8x128xi1>
    %128 = vector.shape_cast %125 : vector<1x128xf32> to vector<1x128xf32>
    %129 = vector.broadcast %128 : vector<1x128xf32> to vector<8x128xf32>
    %130 = vector.broadcast %cst_15 : f32 to vector<8x128xf32>
    %131 = arith.select %127, %129, %130 : vector<8x128xi1>, vector<8x128xf32>
    %132 = arith.addf %122, %131 : vector<8x128xf32>
    %c13_i32 = arith.constant 13 : i32
    %133 = vector.broadcast %c13_i32 : i32 to vector<8x1xi32>
    %134 = arith.cmpi eq, %0, %133 : vector<8x1xi32>
    %135 = vector.extract_strided_slice %1 {offsets = [13, 0], sizes = [1, 128], strides = [1, 1]} : vector<16x128xf32> to vector<1x128xf32>
    %cst_16 = arith.constant 0.000000e+00 : f32
    %136 = vector.shape_cast %134 : vector<8x1xi1> to vector<8x1xi1>
    %137 = vector.broadcast %136 : vector<8x1xi1> to vector<8x128xi1>
    %138 = vector.shape_cast %135 : vector<1x128xf32> to vector<1x128xf32>
    %139 = vector.broadcast %138 : vector<1x128xf32> to vector<8x128xf32>
    %140 = vector.broadcast %cst_16 : f32 to vector<8x128xf32>
    %141 = arith.select %137, %139, %140 : vector<8x128xi1>, vector<8x128xf32>
    %142 = arith.addf %132, %141 : vector<8x128xf32>
    %c14_i32 = arith.constant 14 : i32
    %143 = vector.broadcast %c14_i32 : i32 to vector<8x1xi32>
    %144 = arith.cmpi eq, %0, %143 : vector<8x1xi32>
    %145 = vector.extract_strided_slice %1 {offsets = [14, 0], sizes = [1, 128], strides = [1, 1]} : vector<16x128xf32> to vector<1x128xf32>
    %cst_17 = arith.constant 0.000000e+00 : f32
    %146 = vector.shape_cast %144 : vector<8x1xi1> to vector<8x1xi1>
    %147 = vector.broadcast %146 : vector<8x1xi1> to vector<8x128xi1>
    %148 = vector.shape_cast %145 : vector<1x128xf32> to vector<1x128xf32>
    %149 = vector.broadcast %148 : vector<1x128xf32> to vector<8x128xf32>
    %150 = vector.broadcast %cst_17 : f32 to vector<8x128xf32>
    %151 = arith.select %147, %149, %150 : vector<8x128xi1>, vector<8x128xf32>
    %152 = arith.addf %142, %151 : vector<8x128xf32>
    %c15_i32 = arith.constant 15 : i32
    %153 = vector.broadcast %c15_i32 : i32 to vector<8x1xi32>
    %154 = arith.cmpi eq, %0, %153 : vector<8x1xi32>
    %155 = vector.extract_strided_slice %1 {offsets = [15, 0], sizes = [1, 128], strides = [1, 1]} : vector<16x128xf32> to vector<1x128xf32>
    %cst_18 = arith.constant 0.000000e+00 : f32
    %156 = vector.shape_cast %154 : vector<8x1xi1> to vector<8x1xi1>
    %157 = vector.broadcast %156 : vector<8x1xi1> to vector<8x128xi1>
    %158 = vector.shape_cast %155 : vector<1x128xf32> to vector<1x128xf32>
    %159 = vector.broadcast %158 : vector<1x128xf32> to vector<8x128xf32>
    %160 = vector.broadcast %cst_18 : f32 to vector<8x128xf32>
    %161 = arith.select %157, %159, %160 : vector<8x128xi1>, vector<8x128xf32>
    %162 = arith.addf %152, %161 : vector<8x128xf32>
    %cst_19 = arith.constant 0.000000e+00 : f32
    %163 = vector.broadcast %cst_19 : f32 to vector<8x128xf32>
    %164 = arith.maximumf %162, %163 : vector<8x128xf32>
    %165 = arith.truncf %164 : vector<8x128xf32> to vector<8x128xbf16>
    %c0_20 = arith.constant 0 : index
    %c0_21 = arith.constant 0 : index
    %166 = vector.load %arg3[%c0_20, %c0_21] : memref<128x128xbf16, #tpu.memory_space<vmem>>, vector<128x128xbf16>
    %cst_22 = arith.constant dense<0.000000e+00> : vector<8x128xf32>
    %167 = tpu.matmul %165, %166, %cst_22 {dimension_numbers = #tpu.dot_dimension_numbers<[1], [0], [0], [1], [0, 0, 1, 1], [], []>} : vector<8x128xbf16>, vector<128x128xbf16>, vector<8x128xf32> -> vector<8x128xf32>
    %c0_23 = arith.constant 0 : index
    %c0_24 = arith.constant 0 : index
    %168 = vector.load %arg4[%c0_23, %c0_24] : memref<1x128xf32, #tpu.memory_space<vmem>>, vector<1x128xf32>
    %169 = vector.broadcast %168 : vector<1x128xf32> to vector<8x128xf32>
    %170 = arith.addf %167, %169 : vector<8x128xf32>
    %cst_25 = arith.constant 0.000000e+00 : f32
    %171 = vector.broadcast %cst_25 : f32 to vector<8x128xf32>
    %172 = arith.maximumf %170, %171 : vector<8x128xf32>
    %173 = arith.truncf %172 : vector<8x128xf32> to vector<8x128xbf16>
    %c0_26 = arith.constant 0 : index
    %c0_27 = arith.constant 0 : index
    %174 = vector.load %arg5[%c0_26, %c0_27] : memref<128x128xbf16, #tpu.memory_space<vmem>>, vector<128x128xbf16>
    %cst_28 = arith.constant dense<0.000000e+00> : vector<8x128xf32>
    %175 = tpu.matmul %173, %174, %cst_28 {dimension_numbers = #tpu.dot_dimension_numbers<[1], [0], [0], [1], [0, 0, 1, 1], [], []>} : vector<8x128xbf16>, vector<128x128xbf16>, vector<8x128xf32> -> vector<8x128xf32>
    %c0_29 = arith.constant 0 : index
    %c0_30 = arith.constant 0 : index
    %176 = vector.load %arg6[%c0_29, %c0_30] : memref<1x128xf32, #tpu.memory_space<vmem>>, vector<1x128xf32>
    %177 = vector.broadcast %176 : vector<1x128xf32> to vector<8x128xf32>
    %178 = arith.addf %175, %177 : vector<8x128xf32>
    %c0_31 = arith.constant 0 : index
    %c0_32 = arith.constant 0 : index
    %179 = vector.load %arg7[%c0_31, %c0_32] : memref<8x128xf32, #tpu.memory_space<vmem>>, vector<8x128xf32>
    tpu.vector_store %arg7[%c0_31, %c0_32], %178 {strides = array<i32>} : memref<8x128xf32, #tpu.memory_space<vmem>>, vector<8x128xf32>,
    return
  }
  func.func @transform_0(%arg0: i32) -> (i32, i32) {
    %c0_i32 = arith.constant 0 : i32
    %c0_i32_0 = arith.constant 0 : i32
    return %arg0, %c0_i32 : i32, i32
  }
  func.func @transform_1(%arg0: i32) -> (i32, i32) {
    %c0_i32 = arith.constant 0 : i32
    %c0_i32_0 = arith.constant 0 : i32
    %c0_i32_1 = arith.constant 0 : i32
    return %c0_i32, %c0_i32_0 : i32, i32
  }
  func.func @transform_2(%arg0: i32) -> (i32, i32) {
    %c0_i32 = arith.constant 0 : i32
    %c0_i32_0 = arith.constant 0 : i32
    %c0_i32_1 = arith.constant 0 : i32
    return %c0_i32, %c0_i32_0 : i32, i32
  }
  func.func @transform_3(%arg0: i32) -> (i32, i32) {
    %c0_i32 = arith.constant 0 : i32
    %c0_i32_0 = arith.constant 0 : i32
    %c0_i32_1 = arith.constant 0 : i32
    return %c0_i32, %c0_i32_0 : i32, i32
  }
  func.func @transform_4(%arg0: i32) -> (i32, i32) {
    %c0_i32 = arith.constant 0 : i32
    %c0_i32_0 = arith.constant 0 : i32
    %c0_i32_1 = arith.constant 0 : i32
    return %c0_i32, %c0_i32_0 : i32, i32
  }
  func.func @transform_5(%arg0: i32) -> (i32, i32) {
    %c0_i32 = arith.constant 0 : i32
    %c0_i32_0 = arith.constant 0 : i32
    %c0_i32_1 = arith.constant 0 : i32
    return %c0_i32, %c0_i32_0 : i32, i32
  }
  func.func @transform_6(%arg0: i32) -> (i32, i32) {
    %c0_i32 = arith.constant 0 : i32
    %c0_i32_0 = arith.constant 0 : i32
    return %arg0, %c0_i32 : i32, i32
  }
}

</mosaic_0001>

<bundles_post_ra>
// kernel: tpu_custom_call.1
= control target key start
LH: loop header
LB: loop body
LE: loop exit
PB: predicated region body
PF: predicated region fallthrough
CT: control target
= control target key end

     0   :  { %11 = vsyncpa [#allocation3], 0  ;;  %s664_s0 = inlined_call_operand.vmem [shape: s32[8,1], index: 0, kind: input, shape index: {}]   ;;  %s665_s1 = inlined_call_operand.hbm [shape: f32[16,128], index: 1, kind: input, shape index: {}]   ;;  %s666_s2 = inlined_call_operand.hbm [shape: bf16[128,128], index: 2, kind: input, shape index: {}]   ;;  %s667_s3 = inlined_call_operand.vmem [shape: f32[1,128], index: 3, kind: input, shape index: {}]   ;;  %s668_s4 = inlined_call_operand.hbm [shape: bf16[128,128], index: 4, kind: input, shape index: {}]   ;;  %s669_s5 = inlined_call_operand.vmem [shape: f32[1,128], index: 5, kind: input, shape index: {}]   ;;  %s670_s6 = inlined_call_operand.hbm [shape: f32[8,128], index: 6, kind: output, shape index: {}]  }
   0x1   :  { %12 = vsyncpa [#allocation6], 0  ;;  %s33_s23 = sshll.u32 %s666_s2, 4  ;;  %s34_s23 = int_to_ptr.hbm [resolvable:$true] %s33_s23 }
   0x2   :  { %13 = vsyncpa [#allocation4], 0  ;;  %s599_s24 = smov [#allocation5]   ;;  %s20_s28 = sshll.u32 %s665_s1, 4  ;;  %s21_s28 = int_to_ptr.hbm [resolvable:$true] %s20_s28 }
   0x3   :  { %s35_s25 = sshll.u32 %s599_s24, 4  ;;  %s600_s29 = smov 64   ;;  %s36_s25 = int_to_ptr.vmem [resolvable:$true] %s35_s25 }
   0x4   :  { %s601_s30 = smov 4   ;;  %s602_s7 = smov [#allocation2]  }
   0x5   :  { %41 = dma.hbm_to_vmem [thread:$0]  %s34_s23, 1024, %s36_s25, [#allocation6], %s600_s29, %s600_s29, %s601_s30  }
   0x6   :  { %s22_s8 = sshll.u32 %s602_s7, 4  ;;  %s603_s9 = smov 128   ;;  %s23_s8 = int_to_ptr.vmem [resolvable:$true] %s22_s8 }
   0x7   :  { %s604_s10 = smov 8   ;;  %s48_s12 = sshll.u32 %s668_s4, 4  ;;  %s49_s12 = int_to_ptr.hbm [resolvable:$true] %s48_s12 }
   0x8   :  { %28 = dma.hbm_to_vmem [thread:$0]  %s21_s28, 256, %s23_s8, [#allocation3], %s603_s9, %s603_s9, %s604_s10  }
   0x9   :  { %s605_s13 = smov [#allocation7]  }
   0xa   :  { %s50_s14 = sshll.u32 %s605_s13, 4  ;;  %s51_s14 = int_to_ptr.vmem [resolvable:$true] %s50_s14 }
   0xb   :  { %56 = dma.hbm_to_vmem [thread:$0]  %s49_s12, 1024, %s51_s14, [#allocation6], %s600_s29, %s600_s29, %s601_s30  }
   0xc   :  { %593 = dma.done.wait [#allocation3], 256  }
   0xd   :  { %594 = vsyncadd [#allocation3], 4294967040 }
   0xe   :  { %595 = dma.done.wait [#allocation6], 2048  }
   0xf   :  { %596 = vsyncadd [#allocation6], 4294965248  ;;  %v606_v0 = vmov 0   ;;  %v71_v1 = vld [vmem:[%s664_s0] sm:$0xff]  ;;  %v474_v18 = vld [vmem:[#allocation5 + $0x38] sm:$0xff]  ;;  %s607_s18 = smov [#allocation8]  }
  0x10   :  { %494 = vset.pattern.permute.xlu2 %v606_v0  ;;  %493 = vset.pattern.permute.xlu1 %v606_v0  ;;  %vm110_vm0 = vcmp.eq.s32.totalorder %v71_v1, 4  ;;  %vm92_vm1 = vcmp.eq.s32.totalorder %v71_v1, 2  ;;  %vm74_vm2 = vcmp.eq.s32.totalorder %v71_v1, 0  ;;  %vm119_vm3 = vcmp.eq.s32.totalorder %v71_v1, 5  ;;  %v473_v19 = vld [vmem:[#allocation5 + $0x30] sm:$0xff]  ;;  %v472_v20 = vld [vmem:[#allocation5 + $0x28] sm:$0xff] }
  0x11   :  { %492 = vset.pattern.permute.xlu0 %v606_v0  ;;  %v111_v2 = vsel %vm110_vm0, 1, %v606_v0  ;;  %v93_v3 = vsel %vm92_vm1, 1, %v606_v0  ;;  %v75_v4 = vsel %vm74_vm2, 1, %v606_v0  ;;  %vm101_vm4 = vcmp.eq.s32.totalorder %v71_v1, 3  ;;  %288 = vmatpush.bf16.msra.mxu0 %v474_v18  ;;  %v471_v22 = vld [vmem:[#allocation5 + $0x20] sm:$0xff]  ;;  %v470_v25 = vld [vmem:[#allocation5 + $0x18] sm:$0xff] }
  0x12   :  { %113 = vperm.xlu2 %494, %v111_v2   ;;  %95 = vperm.xlu1 %493, %v93_v3   ;;  %vm83_vm5 = vcmp.eq.s32.totalorder %v71_v1, 1  ;;  %v120_v5 = vsel %vm119_vm3, 1, %v606_v0  ;;  %v102_v6 = vsel %vm101_vm4, 1, %v606_v0  ;;  %vm146_vm6 = vcmp.eq.s32.totalorder %v71_v1, 8  ;;  %v72_v26 = vld [vmem:[#allocation2] sm:$0xff]  ;;  %v468_v34 = vld [vmem:[#allocation5 + $0x8] sm:$0xff] }
  0x13   :  { %77 = vperm.xlu0 %492, %v75_v4   ;;  %v84_v7 = vsel %vm83_vm5, 1, %v606_v0  ;;  %vm137_vm7 = vcmp.eq.s32.totalorder %v71_v1, 7  ;;  %vm128_vm8 = vcmp.eq.s32.totalorder %v71_v1, 6  ;;  %v147_v8 = vsel %vm146_vm6, 1, %v606_v0  ;;  %v469_v28 = vld [vmem:[#allocation5 + $0x10] sm:$0xff]  ;;  %v467_v39 = vld [vmem:[#allocation5] sm:$0xff] }
  0x14   :  { %v138_v9 = vsel %vm137_vm7, 1, %v606_v0  ;;  %v129_v10 = vsel %vm128_vm8, 1, %v606_v0  ;;  %vm173_vm9 = vcmp.eq.s32.totalorder %v71_v1, 11  ;;  %vm164_vm10 = vcmp.eq.s32.totalorder %v71_v1, 10  ;;  %v73_v51 = vld [vmem:[#allocation2 + $0x8] sm:$0xff]  ;;  %v481_v57 = vld [vmem:[#allocation7 + $0x30] sm:$0xff] }
  0x15   :  { %vm155_vm11 = vcmp.eq.s32.totalorder %v71_v1, 9  ;;  %v174_v11 = vsel %vm173_vm9, 1, %v606_v0  ;;  %v165_v12 = vsel %vm164_vm10, 1, %v606_v0  ;;  %vm200_vm12 = vcmp.eq.s32.totalorder %v71_v1, 14  ;;  %289 = vmatpush.bf16.msra.mxu0 %v473_v19  ;;  %v482_v53 = vld [vmem:[#allocation7 + $0x38] sm:$0xff]  ;;  %s390_s19 = sshll.u32 %s607_s18, 4  ;;  %s391_s19 = int_to_ptr.vmem [resolvable:$true] %s390_s19 }
  0x16   :  { %v156_v13 = vsel %vm155_vm11, 1, %v606_v0  ;;  %vm191_vm13 = vcmp.eq.s32.totalorder %v71_v1, 13  ;;  %vm182_vm14 = vcmp.eq.s32.totalorder %v71_v1, 12  ;;  %v201_v14 = vsel %vm200_vm12, 1, %v606_v0  ;;  %371 = vmatpush.bf16.msra.mxu1 %v482_v53  ;;  %s392_s22 = sshll.u32 %s670_s6, 4  ;;  %s393_s22 = int_to_ptr.hbm [resolvable:$true] %s392_s22 }
  0x17   :  { %v192_v15 = vsel %vm191_vm13, 1, %v606_v0  ;;  %v183_v16 = vsel %vm182_vm14, 1, %v606_v0  ;;  %vm209_vm15 = vcmp.eq.s32.totalorder %v71_v1, 15  ;;  %v80_v29 = vperm.slane %v72_v26, 0  ;;  %v480_v1 = vld [vmem:[#allocation7 + $0x28] sm:$0xff] }
  0x18   :  { %v210_v17 = vsel %vm209_vm15, 1, %v606_v0  ;;  %v89_v30 = vperm.slane %v72_v26, 1  ;;  %v98_v32 = vperm.slane %v72_v26, 2  ;;  %v107_v36 = vperm.slane %v72_v26, 3 }
  0x19   :  { %290 = vmatpush.bf16.msra.mxu0 %v472_v20  ;;  %v116_v40 = vperm.slane %v72_v26, 4  ;;  %v125_v43 = vperm.slane %v72_v26, 5  ;;  %v134_v49 = vperm.slane %v72_v26, 6  ;;  %v143_v55 = vperm.slane %v72_v26, 7 }
  0x1a   :  { %122 = vperm.xlu2 %494, %v120_v5   ;;  %104 = vperm.xlu1 %493, %v102_v6   ;;  %v152_v58 = vperm.slane %v73_v51, 0  ;;  %v161_v62 = vperm.slane %v73_v51, 1  ;;  %v170_v4 = vperm.slane %v73_v51, 2 }
  0x1b   :  { %86 = vperm.xlu0 %492, %v84_v7   ;;  %372 = vmatpush.bf16.msra.mxu1 %v481_v57 }
  0x1d   :  { %291 = vmatpush.bf16.msra.mxu0 %v471_v22 }
  0x1f   :  { %373 = vmatpush.bf16.msra.mxu1 %v480_v1 }
  0x21   :  { %292 = vmatpush.bf16.msra.mxu0 %v470_v25 }
  0x22   :  { %149 = vperm.xlu2 %494, %v147_v8   ;;  %140 = vperm.xlu1 %493, %v138_v9   ;;  %v479_v9 = vld [vmem:[#allocation7 + $0x20] sm:$0xff] }
  0x23   :  { %131 = vperm.xlu0 %492, %v129_v10   ;;  %v179_v10 = vperm.slane %v73_v51, 3  ;;  %374 = vmatpush.bf16.msra.mxu1 %v479_v9 }
  0x25   :  { %293 = vmatpush.bf16.msra.mxu0 %v469_v28 }
  0x29   :  { %294 = vmatpush.bf16.msra.mxu0 %v468_v34 }
  0x2a   :  { %176 = vperm.xlu2 %494, %v174_v11   ;;  %167 = vperm.xlu1 %493, %v165_v12  }
  0x2b   :  { %158 = vperm.xlu0 %492, %v156_v13   ;;  %v188_v13 = vperm.slane %v73_v51, 4 }
  0x2d   :  { %295 = vmatpush.bf16.msra.mxu0 %v467_v39 }
  0x32   :  { %203 = vperm.xlu2 %494, %v201_v14   ;;  %194 = vperm.xlu1 %493, %v192_v15   ;;  %v478_v15 = vld [vmem:[#allocation7 + $0x18] sm:$0xff] }
  0x33   :  { %185 = vperm.xlu0 %492, %v183_v16   ;;  %375 = vmatpush.bf16.msra.mxu1 %v478_v15 }
  0x3b   :  { %212 = vperm.xlu0 %492, %v210_v17   ;;  %v197_v17 = vperm.slane %v73_v51, 5 }
  0x6c   :  { %v114_v21 = vpop.permute.xlu2 %113 }
  0x6d   :  { %vm115_vm4 = vcmp.eq.s32.totalorder %v114_v21, 1 }
  0x6e   :  { %v117_v48 = vsel %vm115_vm4, %v116_v40, 0.0 }
  0x74   :  { %v123_v27 = vpop.permute.xlu2 %122 }
  0x75   :  { %vm124_vm5 = vcmp.eq.s32.totalorder %v123_v27, 1  ;;  %v215_v27 = vperm.slane %v73_v51, 7 }
  0x76   :  { %v126_v54 = vsel %vm124_vm5, %v125_v43, 0.0  ;;  %v496_v43 = vld [vmem:[%s669_s5] ss:$0 sm:$0xff] }
  0x7c   :  { %v150_v44 = vpop.permute.xlu2 %149 }
  0x7d   :  { %vm151_vm8 = vcmp.eq.s32.totalorder %v150_v44, 1 }
  0x7e   :  { %v153_v2 = vsel %vm151_vm8, %v152_v58, 0.0 }
  0x84   :  { %v96_v23 = vpop.permute.xlu1 %95  ;;  %v177_v3 = vpop.permute.xlu2 %176 }
  0x85   :  { %v78_v24 = vpop.permute.xlu0 %77  ;;  %vm97_vm1 = vcmp.eq.s32.totalorder %v96_v23, 1  ;;  %vm178_vm11 = vcmp.eq.s32.totalorder %v177_v3, 1  ;;  %v477_v23 = vld [vmem:[#allocation7 + $0x10] sm:$0xff] }
  0x86   :  { %vm79_vm0 = vcmp.eq.s32.totalorder %v78_v24, 1  ;;  %v99_v41 = vsel %vm97_vm1, %v98_v32, 0.0  ;;  %v180_v16 = vsel %vm178_vm11, %v179_v10, 0.0  ;;  %v206_v24 = vperm.slane %v73_v51, 6  ;;  %376 = vmatpush.bf16.msra.mxu1 %v477_v23 }
  0x87   :  { %v81_v35 = vsel %vm79_vm0, %v80_v29, 0.0 }
  0x8c   :  { %v105_v31 = vpop.permute.xlu1 %104  ;;  %v204_v20 = vpop.permute.xlu2 %203 }
  0x8d   :  { %v87_v33 = vpop.permute.xlu0 %86  ;;  %vm106_vm3 = vcmp.eq.s32.totalorder %v105_v31, 1  ;;  %vm205_vm14 = vcmp.eq.s32.totalorder %v204_v20, 1 }
  0x8e   :  { %vm88_vm2 = vcmp.eq.s32.totalorder %v87_v33, 1  ;;  %v108_v45 = vsel %vm106_vm3, %v107_v36, 0.0  ;;  %v207_v28 = vsel %vm205_vm14, %v206_v24, 0.0  ;;  %v475_v36 = vld [vmem:[#allocation7] sm:$0xff] }
  0x8f   :  { %v90_v37 = vsel %vm88_vm2, %v89_v30, 0.0 }
  0x90   :  { %v91_v38 = vadd.f32 %v90_v37, %v81_v35  ;;  %v476_v35 = vld [vmem:[#allocation7 + $0x8] sm:$0xff]  ;;  %v495_v37 = vld [vmem:[%s667_s3] ss:$0 sm:$0xff] }
  0x91   :  { %377 = vmatpush.bf16.msra.mxu1 %v476_v35 }
  0x92   :  { %v100_v42 = vadd.f32 %v99_v41, %v91_v38 }
  0x94   :  { %v109_v46 = vadd.f32 %v108_v45, %v100_v42  ;;  %v141_v47 = vpop.permute.xlu1 %140 }
  0x95   :  { %v132_v50 = vpop.permute.xlu0 %131  ;;  %vm142_vm7 = vcmp.eq.s32.totalorder %v141_v47, 1  ;;  %378 = vmatpush.bf16.msra.mxu1 %v475_v36 }
  0x96   :  { %v118_v52 = vadd.f32 %v117_v48, %v109_v46  ;;  %vm133_vm6 = vcmp.eq.s32.totalorder %v132_v50, 1  ;;  %v144_v61 = vsel %vm142_vm7, %v143_v55, 0.0 }
  0x97   :  { %v135_v59 = vsel %vm133_vm6, %v134_v49, 0.0 }
  0x98   :  { %v127_v56 = vadd.f32 %v126_v54, %v118_v52 }
  0x9a   :  { %v136_v60 = vadd.f32 %v135_v59, %v127_v56 }
  0x9c   :  { %v145_v63 = vadd.f32 %v144_v61, %v136_v60  ;;  %v168_v0 = vpop.permute.xlu1 %167 }
  0x9d   :  { %v159_v5 = vpop.permute.xlu0 %158  ;;  %vm169_vm9 = vcmp.eq.s32.totalorder %v168_v0, 1 }
  0x9e   :  { %v154_v6 = vadd.f32 %v153_v2, %v145_v63  ;;  %vm160_vm10 = vcmp.eq.s32.totalorder %v159_v5, 1  ;;  %v171_v11 = vsel %vm169_vm9, %v170_v4, 0.0 }
  0x9f   :  { %v162_v7 = vsel %vm160_vm10, %v161_v62, 0.0 }
  0xa0   :  { %v163_v8 = vadd.f32 %v162_v7, %v154_v6 }
  0xa2   :  { %v172_v12 = vadd.f32 %v171_v11, %v163_v8 }
  0xa4   :  { %v195_v14 = vpop.permute.xlu1 %194  ;;  %v181_v19 = vadd.f32 %v180_v16, %v172_v12 }
  0xa5   :  { %v186_v18 = vpop.permute.xlu0 %185  ;;  %vm196_vm12 = vcmp.eq.s32.totalorder %v195_v14, 1 }
  0xa6   :  { %vm187_vm13 = vcmp.eq.s32.totalorder %v186_v18, 1  ;;  %v198_v25 = vsel %vm196_vm12, %v197_v17, 0.0 }
  0xa7   :  { %v189_v21 = vsel %vm187_vm13, %v188_v13, 0.0 }
  0xa8   :  { %v190_v22 = vadd.f32 %v189_v21, %v181_v19 }
  0xaa   :  { %v199_v26 = vadd.f32 %v198_v25, %v190_v22 }
  0xac   :  { %v208_v30 = vadd.f32 %v207_v28, %v199_v26 }
  0xad   :  { %v213_v29 = vpop.permute.xlu0 %212 }
  0xae   :  { %vm214_vm15 = vcmp.eq.s32.totalorder %v213_v29, 1 }
  0xaf   :  { %v216_v31 = vsel %vm214_vm15, %v215_v27, 0.0 }
  0xb0   :  { %v217_v32 = vadd.f32 %v216_v31, %v208_v30 }
  0xb2   :  { %v218_v33 = vmax.f32 %v217_v32, 0.0 }
  0xb4   :  { %v219_v34 = vpack.c.bf16 %v218_v33, %v218_v33 }
  0xb6   :  { %296 = vmatmul.bf16.vlgmr.msra.gmra.mxu0 %v219_v34 }
 0x133   :  { %v297_v38 = vpop.f32.mrf.mxu0 }
 0x134   :  { %v298_v39 = vadd.f32 %v495_v37, %v297_v38 }
 0x136   :  { %v301_v40 = vmax.f32 %v298_v39, 0.0 }
 0x138   :  { %v302_v41 = vpack.c.bf16 %v301_v40, %v301_v40 }
 0x13a   :  { %379 = vmatmul.bf16.vlgmr.msra.gmra.mxu1 %v302_v41 }
 0x13b   :  { %v299_v42 = vpop.f32.mrf.mxu0 }
 0x1b7   :  { %v380_v44 = vpop.f32.mrf.mxu1 }
 0x1b8   :  { %v381_v45 = vadd.f32 %v496_v43, %v380_v44 }
 0x1ba   :  { %384 = vst [vmem:[#allocation8] sm:$0xff] %v381_v45 }
 0x1bb   :  { %395 = dma.vmem_to_hbm [thread:$0]  %s391_s19, 128, %s393_s22, [#allocation4]  }
 0x1bf   :  { %v382_v46 = vpop.f32.mrf.mxu1 }
 0x1c0   :  { %597 = dma.done.wait [#allocation4], 128  }
 0x1c1   :  { %598 = vsyncadd [#allocation4], 4294967168 }
 0x1c2   :  { %400 = vsyncpa [#allocation3], 1 }
 0x1c3   :  { %401 = vsyncpa [#allocation6], 1 }
 0x1c4   :  { %402 = vsyncpa [#allocation4], 1 }

</bundles_post_ra>
